<compile_context>
chip_gen: v7x
topology: tpu7x:2x2x1
jax: 0.10.0
libtpu: 0.0.40
codegen_flags: <defaults>
</compile_context>

<pallas_src>
import functools

import jax
import jax.numpy as jnp
from jax.experimental import pallas as pl
from jax.experimental.pallas import tpu as pltpu


# ---------------------------------------------------------------------------
# Single fused kernel:
#   Conv1d(+bias, via Toeplitz w/ bias row) -> ReLU -> MaxPool1d(2) -> Flatten -> Linear(+bias) -> ReLU
# ---------------------------------------------------------------------------

def fused_model_kernel(x_ref, tt_ref, wl_ref, bl_ref, o_ref):
    # x:  (TB, Cin*L + 1)       flattened NCL input tile + trailing ones column (bias fold)
    # tt: (Cin*L + 1, 2*P*Co2)  conv-as-Toeplitz weight + bias row; columns = pair*128 + p*16 + co
    # wl: (P*Co2, H)            linear weight with the PyTorch flatten permutation folded in
    # bl: (1, H)
    conv = jnp.dot(x_ref[...], tt_ref[...], preferred_element_type=jnp.float32)
    conv = jnp.maximum(conv, 0.0)                             # Conv1d(+bias) -> ReLU (both blocks)
    half = conv.shape[-1] // 2
    pooled = jnp.maximum(conv[:, :half], conv[:, half:])      # MaxPool1d(2): aligned lane halves
    y = jnp.dot(pooled, wl_ref[...], preferred_element_type=jnp.float32) + bl_ref[...]
    o_ref[...] = jnp.maximum(y, 0.0).astype(o_ref.dtype)      # Linear -> ReLU


def _round_up(n, m):
    return ((n + m - 1) // m) * m


def _vmem_limit_bytes(tb, kdim, ccols, pcols, hdim):
    f32 = 4
    lane = 128
    x_tile = tb * _round_up(kdim, lane) * f32                 # (TB, 65) lane-padded
    o_tile = tb * _round_up(hdim, lane) * f32                 # (TB, 32) lane-padded
    w_bytes = (_round_up(kdim, 8) * ccols
               + pcols * _round_up(hdim, lane)
               + 8 * _round_up(hdim, lane)) * f32             # tt + wl + bl (resident)
    tmp = tb * (ccols + pcols) * f32                          # conv + pooled temporaries
    need = 2 * (x_tile + o_tile) + 2 * w_bytes + tmp          # double-buffered streams
    return int(min(100 * 1024 * 1024, max(2 * need, 16 * 1024 * 1024)))


@functools.partial(jax.jit, static_argnames=("batch_tile",))
def model_forward(x_ncl, folded, *, batch_tile=2048):
    b = x_ncl.shape[0]
    tt = folded["tt"]                                         # (65, 256)
    wl = folded["wl"]                                         # (128, H)
    bl = folded["bl"]                                         # (1, H)
    kdim, ccols = tt.shape
    pcols, h = wl.shape

    # Batch tile: multiple of 8, never larger than needed for this batch.
    tb = min(batch_tile, _round_up(b, 8))
    bp = _round_up(b, tb)

    # Row-major collapse of (C, L) is free; one pad both rounds the batch up to a tile
    # multiple and appends the ones column that activates the bias row of `tt`.
    x2d = x_ncl.reshape(b, -1)                                # (B, Cin*L)
    xpad = jnp.pad(x2d, ((0, bp - b), (0, 1)), constant_values=1.0)   # (Bp, Cin*L + 1)

    grid = (bp // tb,)
    flops = 2 * bp * (kdim * ccols + pcols * h)
    bytes_accessed = 4 * (bp * kdim + kdim * ccols + pcols * h + h + bp * h)

    out = pl.pallas_call(
        fused_model_kernel,
        out_shape=jax.ShapeDtypeStruct((bp, h), x_ncl.dtype),
        grid=grid,
        in_specs=[
            pl.BlockSpec((tb, kdim), lambda i: (i, 0)),       # stream x tiles
            pl.BlockSpec((kdim, ccols), lambda i: (0, 0)),    # weights: DMA once, stay resident
            pl.BlockSpec((pcols, h), lambda i: (0, 0)),
            pl.BlockSpec((1, h), lambda i: (0, 0)),
        ],
        out_specs=pl.BlockSpec((tb, h), lambda i: (i, 0)),
        compiler_params=pltpu.CompilerParams(
            dimension_semantics=("parallel",),                # batch tiles are independent (2 TCs on v7x)
            vmem_limit_bytes=_vmem_limit_bytes(tb, kdim, ccols, pcols, h),
        ),
        cost_estimate=pl.CostEstimate(
            flops=flops, transcendentals=0, bytes_accessed=bytes_accessed),
    )(xpad, tt, wl, bl)
    return out[:b]


# ---------------------------------------------------------------------------
# Parameter folding (init/trace time, weights only — run ONCE and keep device-resident)
# ---------------------------------------------------------------------------

def fold_params(params, cin=4, length=16, k=3, pad=1):
    # Merge the two branch blocks (same input) -> one conv, Cout2 = 16.
    w = jnp.concatenate([params["w1"], params["w2"]], axis=0)    # (Cout2, Cin, K) PyTorch OIH
    b = jnp.concatenate([params["b1"], params["b2"]], axis=0)    # (Cout2,)
    cout2 = w.shape[0]
    npool = length // 2

    # Banded Toeplitz: conv_out[n, co, l] = sum_{ci,m} x[n, ci, m] * TT[ci*L+m, col(l,co)]
    # with col = pair*(npool*cout2) + p*cout2 + co and l = 2p + pair (pool pairs in two halves).
    ci = jnp.arange(cin).reshape(cin, 1, 1, 1, 1)
    m = jnp.arange(length).reshape(1, length, 1, 1, 1)
    pair = jnp.arange(2).reshape(1, 1, 2, 1, 1)
    p = jnp.arange(npool).reshape(1, 1, 1, npool, 1)
    co = jnp.arange(cout2).reshape(1, 1, 1, 1, cout2)
    tap = m - (2 * p + pair) + pad                                # conv tap index
    valid = (tap >= 0) & (tap < k)
    tap_c = jnp.clip(tap, 0, k - 1)
    vals = w[co, ci, tap_c] * valid.astype(w.dtype)               # (cin, L, 2, npool, cout2)
    tt = vals.reshape(cin * length, 2 * npool * cout2)            # (64, 256)

    # Fold the conv bias as an extra Toeplitz row (activated by the ones column appended to x).
    bias_row = jnp.tile(b, 2 * npool).reshape(1, 2 * npool * cout2)
    tt = jnp.concatenate([tt, bias_row], axis=0)                  # (65, 256)

    # Fold PyTorch C-major flatten (f = co*npool + p) into the Linear weight rows so the
    # kernel's pooled layout (p*cout2 + co) feeds the second matmul directly.
    wl = params["wl"]                                             # (H, F) PyTorch layout
    h = wl.shape[0]
    wl_perm = (wl.T.reshape(cout2, npool, h)
               .transpose(1, 0, 2)
               .reshape(npool * cout2, h))                        # (128, H)
    bl = params["bl"].reshape(1, h)
    return {"tt": tt, "wl": wl_perm, "bl": bl}


# ---------------------------------------------------------------------------
# Deterministic parameters (PyTorch layouts) and a pure-JAX reference of the module
# ---------------------------------------------------------------------------

def init_params(key, cin=4, cout=8, k=3, length=16, hidden=32):
    ks = jax.random.split(key, 6)
    feat = 2 * cout * (length // 2)     # concat channels * pooled length = 128
    s = 0.1
    return {
        "w1": s * jax.random.normal(ks[0], (cout, cin, k), jnp.float32),   # Conv1d (O, I, K)
        "b1": s * jax.random.normal(ks[1], (cout,), jnp.float32),
        "w2": s * jax.random.normal(ks[2], (cout, cin, k), jnp.float32),
        "b2": s * jax.random.normal(ks[3], (cout,), jnp.float32),
        "wl": s * jax.random.normal(ks[4], (hidden, feat), jnp.float32),   # Linear (H, F)
        "bl": s * jax.random.normal(ks[5], (hidden,), jnp.float32),
    }


def reference_forward(x, params):
    # Plain-JAX mirror of the PyTorch module (for validation only).
    def block(x, w, b):
        y = jax.lax.conv_general_dilated(
            x, w, window_strides=(1,), padding=((1, 1),),
            dimension_numbers=("NCH", "OIH", "NCH"),
            precision=jax.lax.Precision.HIGHEST)
        y = jnp.maximum(y + b[None, :, None], 0.0)
        bb, cc, ll = y.shape
        return jnp.max(y.reshape(bb, cc, ll // 2, 2), axis=-1)   # MaxPool1d(2)

    y1 = block(x, params["w1"], params["b1"])
    y2 = block(x, params["w2"], params["b2"])
    cat = jnp.concatenate([y1, y2], axis=1)                      # torch.cat(dim=1)
    flat = cat.reshape(cat.shape[0], -1)                         # C-major flatten
    out = jnp.dot(flat, params["wl"].T, precision=jax.lax.Precision.HIGHEST) + params["bl"]
    return jnp.maximum(out, 0.0)


# TODO(synk): the LST (LSTM), Dropout and BatchNorm1d layer types of the generic Block
# factory, and the training loop (fit/loss_batch), are not exercised by this instantiation
# and are not implemented.

if __name__ == "__main__":
    key = jax.random.PRNGKey(0)
    k_x, k_p, k_xb = jax.random.split(key, 3)
    params = init_params(k_p)
    folded = jax.tree_util.tree_map(jnp.asarray, fold_params(params))   # fold once, keep device-resident

    # Small canonical input (matches the PyTorch module's expected NCL shape).
    x = jax.random.normal(k_x, (2, 4, 16), jnp.float32)
    out = jax.block_until_ready(model_forward(x, folded))
    assert out.shape == (2, 32) and out.dtype == jnp.float32
    ref = reference_forward(x, params)
    err = float(jnp.max(jnp.abs(out - ref)))
    assert err < 1e-2, f"mismatch vs reference (B=2): {err}"

    # Larger ragged batch exercises the batch grid, tile padding and resident weights.
    xb = jax.random.normal(k_xb, (300, 4, 16), jnp.float32)
    out_b = jax.block_until_ready(model_forward(xb, folded, batch_tile=128))
    ref_b = reference_forward(xb, params)
    err_b = float(jnp.max(jnp.abs(out_b - ref_b)))
    assert out_b.shape == (300, 32) and err_b < 1e-2, f"mismatch vs reference (B=300): {err_b}"

    print("KERNEL_OK")
</pallas_src>

<mosaic_0001>
module attributes {stable_mosaic.version = 11 : i64} {
  func.func @fused_model_kernel(%arg0: i32, %arg1: memref<8x65xf32, #tpu.memory_space<vmem>>, %arg2: memref<65x256xf32, #tpu.memory_space<vmem>>, %arg3: memref<128x32xf32, #tpu.memory_space<vmem>>, %arg4: memref<1x32xf32, #tpu.memory_space<vmem>>, %arg5: memref<8x32xf32, #tpu.memory_space<vmem>>) attributes {dimension_semantics = [#tpu.dimension_semantics<parallel>], iteration_bounds = array<i64: 1>, scalar_prefetch = 0 : i64, scratch_operands = 0 : i64, tpu.core_type = #tpu.core_type<tc>, window_params = [{transform_indices = @transform_0, window_bounds = array<i64: 8, 65>}, {pipeline_mode = #tpu.pipeline_mode<synchronous>, transform_indices = @transform_1, window_bounds = array<i64: 65, 256>}, {pipeline_mode = #tpu.pipeline_mode<synchronous>, transform_indices = @transform_2, window_bounds = array<i64: 128, 32>}, {pipeline_mode = #tpu.pipeline_mode<synchronous>, transform_indices = @transform_3, window_bounds = array<i64: 1, 32>}, {transform_indices = @transform_4, window_bounds = array<i64: 8, 32>}]} {
    %c0 = arith.constant 0 : index
    %c0_0 = arith.constant 0 : index
    %0 = vector.load %arg1[%c0, %c0_0] : memref<8x65xf32, #tpu.memory_space<vmem>>, vector<8x65xf32>
    %c0_1 = arith.constant 0 : index
    %c0_2 = arith.constant 0 : index
    %1 = vector.load %arg2[%c0_1, %c0_2] : memref<65x256xf32, #tpu.memory_space<vmem>>, vector<65x256xf32>
    %cst = arith.constant dense<0.000000e+00> : vector<8x256xf32>
    %2 = tpu.matmul %0, %1, %cst {dimension_numbers = #tpu.dot_dimension_numbers<[1], [0], [0], [1], [0, 0, 1, 1], [], []>} : vector<8x65xf32>, vector<65x256xf32>, vector<8x256xf32> -> vector<8x256xf32>
    %cst_3 = arith.constant 0.000000e+00 : f32
    %3 = vector.broadcast %cst_3 : f32 to vector<8x256xf32>
    %4 = arith.maximumf %2, %3 : vector<8x256xf32>
    %5 = vector.extract_strided_slice %4 {offsets = [0, 0], sizes = [8, 128], strides = [1, 1]} : vector<8x256xf32> to vector<8x128xf32>
    %6 = vector.extract_strided_slice %4 {offsets = [0, 128], sizes = [8, 128], strides = [1, 1]} : vector<8x256xf32> to vector<8x128xf32>
    %7 = arith.maximumf %5, %6 : vector<8x128xf32>
    %c0_4 = arith.constant 0 : index
    %c0_5 = arith.constant 0 : index
    %8 = vector.load %arg3[%c0_4, %c0_5] : memref<128x32xf32, #tpu.memory_space<vmem>>, vector<128x32xf32>
    %cst_6 = arith.constant dense<0.000000e+00> : vector<8x32xf32>
    %9 = tpu.matmul %7, %8, %cst_6 {dimension_numbers = #tpu.dot_dimension_numbers<[1], [0], [0], [1], [0, 0, 1, 1], [], []>} : vector<8x128xf32>, vector<128x32xf32>, vector<8x32xf32> -> vector<8x32xf32>
    %c0_7 = arith.constant 0 : index
    %c0_8 = arith.constant 0 : index
    %10 = vector.load %arg4[%c0_7, %c0_8] : memref<1x32xf32, #tpu.memory_space<vmem>>, vector<1x32xf32>
    %11 = vector.broadcast %10 : vector<1x32xf32> to vector<8x32xf32>
    %12 = arith.addf %9, %11 : vector<8x32xf32>
    %cst_9 = arith.constant 0.000000e+00 : f32
    %13 = vector.broadcast %cst_9 : f32 to vector<8x32xf32>
    %14 = arith.maximumf %12, %13 : vector<8x32xf32>
    %c0_10 = arith.constant 0 : index
    %c0_11 = arith.constant 0 : index
    %15 = vector.load %arg5[%c0_10, %c0_11] : memref<8x32xf32, #tpu.memory_space<vmem>>, vector<8x32xf32>
    tpu.vector_store %arg5[%c0_10, %c0_11], %14 {strides = array<i32>} : memref<8x32xf32, #tpu.memory_space<vmem>>, vector<8x32xf32>,
    return
  }
  func.func @transform_0(%arg0: i32) -> (i32, i32) {
    %c0_i32 = arith.constant 0 : i32
    %c0_i32_0 = arith.constant 0 : i32
    return %arg0, %c0_i32 : i32, i32
  }
  func.func @transform_1(%arg0: i32) -> (i32, i32) {
    %c0_i32 = arith.constant 0 : i32
    %c0_i32_0 = arith.constant 0 : i32
    %c0_i32_1 = arith.constant 0 : i32
    return %c0_i32, %c0_i32_0 : i32, i32
  }
  func.func @transform_2(%arg0: i32) -> (i32, i32) {
    %c0_i32 = arith.constant 0 : i32
    %c0_i32_0 = arith.constant 0 : i32
    %c0_i32_1 = arith.constant 0 : i32
    return %c0_i32, %c0_i32_0 : i32, i32
  }
  func.func @transform_3(%arg0: i32) -> (i32, i32) {
    %c0_i32 = arith.constant 0 : i32
    %c0_i32_0 = arith.constant 0 : i32
    %c0_i32_1 = arith.constant 0 : i32
    return %c0_i32, %c0_i32_0 : i32, i32
  }
  func.func @transform_4(%arg0: i32) -> (i32, i32) {
    %c0_i32 = arith.constant 0 : i32
    %c0_i32_0 = arith.constant 0 : i32
    return %arg0, %c0_i32 : i32, i32
  }
}

</mosaic_0001>

<bundles_post_ra>
// kernel: model_forward.1
= control target key start
LH: loop header
LB: loop body
LE: loop exit
PB: predicated region body
PF: predicated region fallthrough
CT: control target
= control target key end

     0   :  { %v320_v3 = vmov 0.0   ;;  %v321_v4 = vmov 0.0|0.0   ;;  %vm40_vm0 = vcmask 1040384   ;;  %vm36_vm1 = vcmask 531456   ;;  %s469_s1 = inlined_call_operand.vmem [shape: f32[65,256], index: 1, kind: input, shape index: {}]   ;;  %s470_s2 = inlined_call_operand.vmem [shape: f32[128,32], index: 2, kind: input, shape index: {}]   ;;  %s471_s0 = inlined_call_operand.vmem [shape: f32[8,65], index: 0, kind: input, shape index: {}]   ;;  %s472_s3 = inlined_call_operand.vmem [shape: f32[1,32], index: 3, kind: input, shape index: {}]   ;;  %s473_s4 = inlined_call_operand.vmem [shape: f32[8,32], index: 4, kind: output, shape index: {}]  }
   0x1   :  { %v19_v0 = vld [vmem:[%s469_s1 + $0x8] sm:$0xff]  ;;  %v21_v1 = vld [vmem:[%s469_s1 + $0x18] sm:$0xff]  ;;  %v18_v2 = vld [vmem:[%s469_s1] sm:$0xff]  ;;  %111 = vmatprep.mubr.f32.mxu0 %v320_v3  ;;  %293 = vmatprep.subr.bf16.mxu1 %v321_v4  ;;  %vm322_vm2 = vmmov 0   ;;  %vm215_vm3 = vcmask 261120  }
   0x2   :  { %v277_v5 = vpack.c.bf16 %v21_v1, %v19_v0  ;;  %v20_v6 = vld [vmem:[%s469_s1 + $0x10] sm:$0xff]  ;;  %v23_v7 = vld [vmem:[%s469_s1 + $0x28] sm:$0xff]  ;;  %v25_v8 = vld [vmem:[%s469_s1 + $0x38] sm:$0xff]  ;;  %274 = vmatprep.mubr.msk.f32.mxu1 %vm322_vm2, %v320_v3 }
   0x3   :  { %v279_v9 = vpack.c.bf16 %v20_v6, %v18_v2  ;;  %v281_v10 = vpack.c.bf16 %v25_v8, %v23_v7  ;;  %v22_v11 = vld [vmem:[%s469_s1 + $0x20] sm:$0xff]  ;;  %v24_v12 = vld [vmem:[%s469_s1 + $0x30] sm:$0xff]  ;;  %v27_v13 = vld [vmem:[%s469_s1 + $0x48] sm:$0xff] }
   0x4   :  { %278 = vmatprep.subr.bf16.mxu0 %v277_v5  ;;  %v29_v14 = vld [vmem:[%s469_s1 + $0x58] sm:$0xff]  ;;  %v283_v15 = vpack.c.bf16 %v24_v12, %v22_v11  ;;  %v26_v17 = vld [vmem:[%s469_s1 + $0x40] sm:$0xff]  ;;  %v28_v18 = vld [vmem:[%s469_s1 + $0x50] sm:$0xff] }
   0x5   :  { %280 = vmatpush1.bf16.msra.mxu0 %v279_v9  ;;  %v285_v16 = vpack.c.bf16 %v29_v14, %v27_v13  ;;  %v31_v19 = vld [vmem:[%s469_s1 + $0x68] sm:$0xff]  ;;  %v33_v20 = vld [vmem:[%s469_s1 + $0x78] sm:$0xff]  ;;  %v121_v21 = vld [vmem:[%s470_s2] sm:$0xff]  ;;  %v287_v26 = vpack.c.bf16 %v28_v18, %v26_v17 }
   0x6   :  { %282 = vmatprep.subr.bf16.mxu0 %v281_v10  ;;  %v122_v22 = vld [vmem:[%s470_s2 + $0x8] sm:$0xff]  ;;  %v123_v24 = vld [vmem:[%s470_s2 + $0x10] sm:$0xff]  ;;  %v124_v25 = vld [vmem:[%s470_s2 + $0x18] sm:$0xff]  ;;  %v289_v27 = vpack.c.bf16 %v33_v20, %v31_v19 }
   0x7   :  { %v294_v23 = vpack.c.bf16 %v122_v22, %v121_v21  ;;  %v30_v28 = vld [vmem:[%s469_s1 + $0x60] sm:$0xff]  ;;  %v32_v29 = vld [vmem:[%s469_s1 + $0x70] sm:$0xff]  ;;  %v297_v30 = vpack.c.bf16 %v124_v25, %v123_v24  ;;  %v126_v32 = vld [vmem:[%s470_s2 + $0x28] sm:$0xff] }
   0x8   :  { %v125_v31 = vld [vmem:[%s470_s2 + $0x20] sm:$0xff]  ;;  %v291_v33 = vpack.c.bf16 %v32_v29, %v30_v28  ;;  %v35_v35 = vld [vmem:[%s469_s1 + $0x88] sm:$0x1]  ;;  %v127_v36 = vld [vmem:[%s470_s2 + $0x30] sm:$0xff] }
   0x9   :  { %284 = vmatpush1.bf16.msra.mxu0 %v283_v15  ;;  %295 = vmatpush3.bf16.msra.mxu1 %v294_v23  ;;  %v300_v34 = vpack.c.bf16 %v126_v32, %v125_v31  ;;  %v128_v37 = vld [vmem:[%s470_s2 + $0x38] sm:$0xff]  ;;  %v34_v38 = vld [vmem:[%s469_s1 + $0x80] sm:$0x1]  ;;  %v130_v42 = vld [vmem:[%s470_s2 + $0x48] sm:$0xff] }
   0xa   :  { %286 = vmatprep.subr.bf16.mxu0 %v285_v16  ;;  %296 = vmatprep.subr.bf16.mxu1 %v321_v4  ;;  %v303_v39 = vpack.c.bf16 %v128_v37, %v127_v36  ;;  %v17_v40 = vld [vmem:[%s471_s0] sm:$0xff]  ;;  %v131_v44 = vld [vmem:[%s470_s2 + $0x50] sm:$0xff]  ;;  %v132_v45 = vld [vmem:[%s470_s2 + $0x58] sm:$0xff] }
   0xb   :  { %v129_v41 = vld [vmem:[%s470_s2 + $0x40] sm:$0xff]  ;;  %v309_v46 = vpack.c.bf16 %v132_v45, %v131_v44  ;;  %v134_v48 = vld [vmem:[%s470_s2 + $0x68] sm:$0xff]  ;;  %v135_v50 = vld [vmem:[%s470_s2 + $0x70] sm:$0xff] }
   0xc   :  { %v306_v43 = vpack.c.bf16 %v130_v42, %v129_v41  ;;  %v133_v47 = vld [vmem:[%s470_s2 + $0x60] sm:$0xff]  ;;  %v136_v51 = vld [vmem:[%s470_s2 + $0x78] sm:$0xff] }
   0xd   :  { %288 = vmatpush1.bf16.msra.mxu0 %v287_v26  ;;  %298 = vmatpush3.bf16.msra.mxu1 %v297_v30  ;;  %v312_v49 = vpack.c.bf16 %v134_v48, %v133_v47  ;;  %v315_v52 = vpack.c.bf16 %v136_v51, %v135_v50  ;;  %v224_v58 = vld [vmem:[%s472_s3] ss:$0 sm:$0xff] }
   0xe   :  { %290 = vmatprep.subr.bf16.mxu0 %v289_v27  ;;  %299 = vmatprep.subr.bf16.mxu1 %v321_v4 }
  0x11   :  { %292 = vmatpush1.bf16.msra.mxu0 %v291_v33  ;;  %301 = vmatpush3.bf16.msra.mxu1 %v300_v34 }
  0x12   :  { %221 = vmatprep.subr.msk.mxu0 %vm40_vm0, %v35_v35  ;;  %302 = vmatprep.subr.bf16.mxu1 %v321_v4 }
  0x15   :  { %222 = vmatpush1.msk.msra.mxu0 %vm40_vm0, %v34_v38  ;;  %304 = vmatpush3.bf16.msra.mxu1 %v303_v39 }
  0x16   :  { %223 = vmatmul.mubr.msk.f32.vlgmr.msra.gmra.mrb[0].mxu0 %vm36_vm1, %v17_v40  ;;  %305 = vmatprep.subr.bf16.mxu1 %v321_v4 }
  0x19   :  { %307 = vmatpush3.bf16.msra.mxu1 %v306_v43 }
  0x1a   :  { %308 = vmatprep.subr.bf16.mxu1 %v321_v4 }
  0x1d   :  { %310 = vmatpush3.bf16.msra.mxu1 %v309_v46 }
  0x1e   :  { %311 = vmatprep.subr.bf16.mxu1 %v321_v4 }
  0x21   :  { %313 = vmatpush3.bf16.msra.mxu1 %v312_v49 }
  0x22   :  { %314 = vmatprep.subr.bf16.mxu1 %v321_v4 }
  0x25   :  { %316 = vmatpush3.bf16.msra.mxu1 %v315_v52 }
  0xe9   :  { %v113_v53 = vpop.f32.mrb[0].mxu0 }
  0xea   :  { %v118_v54 = vmax.f32 %v113_v53, 0.0  ;;  %v115_v55 = vpop.f32.mrb[1].mxu0 }
  0xeb   :  { %v119_v56 = vmax.f32 %v115_v55, 0.0 }
  0xed   :  { %v120_v57 = vmax.f32 %v118_v54, %v119_v56 }
  0xef   :  { %275 = vmatmul.mubr.f32.vlgmr.msra.gmra.mrb[0].mxu1 %v120_v57 }
 0x1c2   :  { %v210_v59 = vpop.f32.mrb[0].mxu1 }
 0x1c3   :  { %v211_v60 = vadd.f32 %v224_v58, %v210_v59  ;;  %v276_v61 = vpop.f32.mrb[1].mxu1 }
 0x1c5   :  { %v214_v62 = vmax.f32 %v211_v60, 0.0 }
 0x1c7   :  { %216 = vst.msk [vmem:[%s473_s4] sm:$0xff] %vm215_vm3, %v214_v62 }

</bundles_post_ra>
